<compile_context>
chip_gen: v6e
topology: v6e:2x2x1
jax: 0.10.0
libtpu: 0.0.40
codegen_flags: <defaults>
</compile_context>

<pallas_src>
import functools

import jax
import jax.numpy as jnp
from jax.experimental import pallas as pl
from jax.experimental.pallas import tpu as pltpu

BN_EPS = 1e-5


def _round_up(n, m):
    return ((n + m - 1) // m) * m


def _chip_generation():
    """Best-effort TPU generation detection ('v5e' / 'v6e' / 'v7x' / 'unknown')."""
    try:
        kind = jax.devices()[0].device_kind.lower()
    except Exception:
        return "unknown"
    if "v5" in kind:
        return "v5e"
    if "v6" in kind:
        return "v6e"
    if "v7" in kind:
        return "v7x"
    return "unknown"


def _nbytes(*arrays):
    return int(sum(int(a.size) * a.dtype.itemsize for a in arrays))


# --------------------------------------------------------------------------
# Kernels
# --------------------------------------------------------------------------

def _generator_fused_kernel(x_ref, w1_ref, b1_ref, w2_ref, b2_ref,
                            gamma_ref, beta_ref, w3_ref, b3_ref,
                            w4_ref, b4_ref, o_ref):
    """Whole batch resident in VMEM: 4 matmuls + BatchNorm in one invocation."""
    bf16 = jnp.bfloat16
    x = x_ref[...].astype(bf16)

    h1 = jnp.dot(x, w1_ref[...], preferred_element_type=jnp.float32) + b1_ref[...]
    h1 = jnp.maximum(h1, 0.0).astype(bf16)

    h2 = jnp.dot(h1, w2_ref[...], preferred_element_type=jnp.float32) + b2_ref[...]

    # BatchNorm1d(512): training-mode batch stats, all f32, affine folded.
    mean = jnp.mean(h2, axis=0, keepdims=True)
    centered = h2 - mean
    var = jnp.mean(centered * centered, axis=0, keepdims=True)
    scale = gamma_ref[...] * jax.lax.rsqrt(var + BN_EPS)   # (1, 512)
    shift = beta_ref[...] - mean * scale                   # (1, 512)
    h2 = jnp.maximum(h2 * scale + shift, 0.0).astype(bf16)

    h3 = jnp.dot(h2, w3_ref[...], preferred_element_type=jnp.float32) + b3_ref[...]
    h3 = jnp.maximum(h3, 0.0).astype(bf16)

    y = jnp.dot(h3, w4_ref[...], preferred_element_type=jnp.float32) + b4_ref[...]
    o_ref[...] = y.astype(o_ref.dtype)


def _layers12(x_ref, w1_ref, b1_ref, w2_ref, b2_ref):
    """Shared layers 1-2: returns f32 h2 for the current batch tile."""
    bf16 = jnp.bfloat16
    x = x_ref[...].astype(bf16)
    h1 = jnp.dot(x, w1_ref[...], preferred_element_type=jnp.float32) + b1_ref[...]
    h1 = jnp.maximum(h1, 0.0).astype(bf16)
    return jnp.dot(h1, w2_ref[...], preferred_element_type=jnp.float32) + b2_ref[...]


def _masked_stats(h2, stats_ref, *, block_b, b_true):
    """Per-tile BN partial sums (sum, sumsq), excluding batch-padding rows."""
    row = (jax.lax.broadcasted_iota(jnp.int32, (block_b, 1), 0)
           + pl.program_id(0) * block_b)
    valid = (row < b_true).astype(jnp.float32)              # (block_b, 1)
    h2m = h2 * valid
    s = jnp.sum(h2m, axis=0, keepdims=True)                 # (1, 512)
    ss = jnp.sum(h2m * h2, axis=0, keepdims=True)           # (1, 512)
    rid = jax.lax.broadcasted_iota(jnp.int32, (8, h2.shape[1]), 0)
    stats_ref[...] = jnp.where(rid == 0, s, jnp.where(rid == 1, ss, 0.0))


def _phase1_stats_kernel(x_ref, w1_ref, b1_ref, w2_ref, b2_ref, stats_ref,
                         *, block_b, b_true):
    """Recompute variant pass 1: layers 1-2, emit ONLY per-tile BN partials."""
    h2 = _layers12(x_ref, w1_ref, b1_ref, w2_ref, b2_ref)
    _masked_stats(h2, stats_ref, block_b=block_b, b_true=b_true)


def _phase1_h2bf16_kernel(x_ref, w1_ref, b1_ref, w2_ref, b2_ref,
                          h2_ref, stats_ref, *, block_b, b_true):
    """bf16-store variant pass 1: layers 1-2, store h2 as bf16 + BN partials."""
    h2 = _layers12(x_ref, w1_ref, b1_ref, w2_ref, b2_ref)
    h2_ref[...] = h2.astype(jnp.bfloat16)
    _masked_stats(h2, stats_ref, block_b=block_b, b_true=b_true)


def _layers34(h2_bf16, scale_ref, shift_ref, w3_ref, b3_ref, w4_ref, b4_ref, o_ref,
              h2_f32):
    """Folded BN normalize + ReLU + layers 3-4 on an f32 h2 tile."""
    bf16 = jnp.bfloat16
    h2 = jnp.maximum(h2_f32 * scale_ref[...] + shift_ref[...], 0.0).astype(bf16)
    h3 = jnp.dot(h2, w3_ref[...], preferred_element_type=jnp.float32) + b3_ref[...]
    h3 = jnp.maximum(h3, 0.0).astype(bf16)
    y = jnp.dot(h3, w4_ref[...], preferred_element_type=jnp.float32) + b4_ref[...]
    o_ref[...] = y.astype(o_ref.dtype)


def _phase2_recompute_kernel(x_ref, w1_ref, b1_ref, w2_ref, b2_ref,
                             scale_ref, shift_ref, w3_ref, b3_ref,
                             w4_ref, b4_ref, o_ref):
    """Recompute variant pass 2: redo layers 1-2 (bit-identical h2), BN, 3-4."""
    h2 = _layers12(x_ref, w1_ref, b1_ref, w2_ref, b2_ref)
    _layers34(None, scale_ref, shift_ref, w3_ref, b3_ref, w4_ref, b4_ref, o_ref, h2)


def _phase2_h2bf16_kernel(h2_ref, scale_ref, shift_ref, w3_ref, b3_ref,
                          w4_ref, b4_ref, o_ref):
    """bf16-store variant pass 2: load bf16 h2, BN normalize in f32, layers 3-4."""
    h2 = h2_ref[...].astype(jnp.float32)
    _layers34(None, scale_ref, shift_ref, w3_ref, b3_ref, w4_ref, b4_ref, o_ref, h2)


# --------------------------------------------------------------------------
# Wrappers
# --------------------------------------------------------------------------

def _pad_input(x, params):
    in_pad = params["w1"].shape[0]
    if x.shape[1] != in_pad:
        x = jnp.pad(x, ((0, 0), (0, in_pad - x.shape[1])))
    return x


def _forward_fused(x_pad, params, generation):
    B, in_pad = x_pad.shape
    out_pad = params["w4"].shape[1]
    args = (x_pad,
            params["w1"], params["b1"], params["w2"], params["b2"],
            params["gamma"], params["beta"],
            params["w3"], params["b3"], params["w4"], params["b4"])

    vmem = pl.BlockSpec(memory_space=pltpu.MemorySpace.VMEM)

    flops = 2 * B * (in_pad * 256 + 256 * 512 + 512 * 256 + 256 * out_pad)
    bytes_accessed = _nbytes(*args) + B * out_pad * 4

    # Generation-aware cap: leave headroom for compiler scratch / output staging.
    phys_vmem = 64 * 1024 * 1024 if generation == "v7x" else 128 * 1024 * 1024
    cap = int(0.75 * phys_vmem)
    param_bytes = _nbytes(*args[1:])
    act_bytes = 4 * B * (in_pad + 256 + 512 + 512 + 256 + out_pad)
    vmem_limit = min(cap, max(8 * 1024 * 1024,
                              2 * (param_bytes + act_bytes) + (2 << 20)))

    return pl.pallas_call(
        _generator_fused_kernel,
        out_shape=jax.ShapeDtypeStruct((B, out_pad), jnp.float32),
        in_specs=[vmem] * len(args),
        out_specs=vmem,
        compiler_params=pltpu.CompilerParams(vmem_limit_bytes=vmem_limit),
        cost_estimate=pl.CostEstimate(flops=flops, transcendentals=512,
                                      bytes_accessed=bytes_accessed),
    )(*args)


def _fold_bn(stats, n_tiles, hidden2, b_true, params):
    """Fold per-tile (sum, sumsq) partials into BN scale/shift (f32, clamped var)."""
    stats = stats.reshape(n_tiles, 8, hidden2)
    total = jnp.sum(stats[:, 0, :], axis=0)
    total_sq = jnp.sum(stats[:, 1, :], axis=0)
    mean = (total / b_true)[None, :]                               # (1, 512)
    var = jnp.maximum((total_sq / b_true)[None, :] - mean * mean, 0.0)
    scale = params["gamma"] * jax.lax.rsqrt(var + BN_EPS)
    shift = params["beta"] - mean * scale
    return scale, shift


def _forward_tiled(x_pad, params, block_b, variant, generation):
    """Batch-tiled two-pass pipeline for large B (no f32 h2 HBM round trip)."""
    b_true, in_pad = x_pad.shape
    out_pad = params["w4"].shape[1]
    hidden2 = params["w2"].shape[1]  # 512

    n_tiles = pl.cdiv(b_true, block_b)
    b_padded = n_tiles * block_b
    if b_padded != b_true:
        # Padded rows are masked out of BN statistics in-kernel and sliced off
        # by the caller; padding is otherwise mathematically inert.
        x_pad = jnp.pad(x_pad, ((0, b_padded - b_true), (0, 0)))

    grid = (n_tiles,)

    def resident(arr):
        return pl.BlockSpec(arr.shape, lambda i: (0, 0))

    vmem_limit = 32 * 1024 * 1024 if generation in ("v7x", "unknown") \
        else 64 * 1024 * 1024
    cparams = pltpu.CompilerParams(
        dimension_semantics=("parallel",),
        vmem_limit_bytes=vmem_limit,
    )

    w12 = (params["w1"], params["b1"], params["w2"], params["b2"])
    w34 = (params["w3"], params["b3"], params["w4"], params["b4"])
    w12_bytes, w34_bytes = _nbytes(*w12), _nbytes(*w34)
    flops12 = 2 * b_padded * (in_pad * 256 + 256 * hidden2)
    flops34 = 2 * b_padded * (hidden2 * 256 + 256 * out_pad)

    x_spec = pl.BlockSpec((block_b, in_pad), lambda i: (i, 0))
    stats_spec = pl.BlockSpec((8, hidden2), lambda i: (i, 0))
    stats_shape = jax.ShapeDtypeStruct((n_tiles * 8, hidden2), jnp.float32)
    out_spec = pl.BlockSpec((block_b, out_pad), lambda i: (i, 0))
    out_shape = jax.ShapeDtypeStruct((b_padded, out_pad), jnp.float32)

    if variant == "recompute":
        # ---- Pass 1: layers 1-2 + per-tile BN partial sums (stats only) ----
        stats = pl.pallas_call(
            functools.partial(_phase1_stats_kernel, block_b=block_b, b_true=b_true),
            grid=grid,
            in_specs=[x_spec] + [resident(a) for a in w12],
            out_specs=stats_spec,
            out_shape=stats_shape,
            compiler_params=cparams,
            cost_estimate=pl.CostEstimate(
                flops=flops12, transcendentals=0,
                bytes_accessed=int(x_pad.nbytes) + w12_bytes
                + n_tiles * 8 * hidden2 * 4),
        )(x_pad, *w12)

        scale, shift = _fold_bn(stats, n_tiles, hidden2, b_true, params)

        # ---- Pass 2: recompute layers 1-2 + BN normalize + layers 3-4 ------
        y = pl.pallas_call(
            _phase2_recompute_kernel,
            grid=grid,
            in_specs=[x_spec] + [resident(a) for a in w12]
            + [resident(scale), resident(shift)]
            + [resident(a) for a in w34],
            out_specs=out_spec,
            out_shape=out_shape,
            compiler_params=cparams,
            cost_estimate=pl.CostEstimate(
                flops=flops12 + flops34, transcendentals=0,
                bytes_accessed=int(x_pad.nbytes) + w12_bytes + w34_bytes
                + 2 * hidden2 * 4 + b_padded * out_pad * 4),
        )(x_pad, *w12, scale, shift, *w34)
        return y

    # -------------------- variant == "h2bf16" (v5e) -------------------------
    # ---- Pass 1: layers 1-2, bf16 h2 store + per-tile BN partial sums ------
    h2_spec = pl.BlockSpec((block_b, hidden2), lambda i: (i, 0))
    h2, stats = pl.pallas_call(
        functools.partial(_phase1_h2bf16_kernel, block_b=block_b, b_true=b_true),
        grid=grid,
        in_specs=[x_spec] + [resident(a) for a in w12],
        out_specs=[h2_spec, stats_spec],
        out_shape=(
            jax.ShapeDtypeStruct((b_padded, hidden2), jnp.bfloat16),
            stats_shape,
        ),
        compiler_params=cparams,
        cost_estimate=pl.CostEstimate(
            flops=flops12, transcendentals=0,
            bytes_accessed=int(x_pad.nbytes) + w12_bytes
            + b_padded * hidden2 * 2 + n_tiles * 8 * hidden2 * 4),
    )(x_pad, *w12)

    scale, shift = _fold_bn(stats, n_tiles, hidden2, b_true, params)

    # ---- Pass 2: normalize bf16 h2 (f32 scale/shift) + layers 3-4 ----------
    y = pl.pallas_call(
        _phase2_h2bf16_kernel,
        grid=grid,
        in_specs=[h2_spec, resident(scale), resident(shift)]
        + [resident(a) for a in w34],
        out_specs=out_spec,
        out_shape=out_shape,
        compiler_params=cparams,
        cost_estimate=pl.CostEstimate(
            flops=flops34, transcendentals=0,
            bytes_accessed=b_padded * hidden2 * 2 + 2 * hidden2 * 4
            + w34_bytes + b_padded * out_pad * 4),
    )(h2, scale, shift, *w34)
    return y


def generator_forward(x, params, out_dim, *, block_b=None, variant=None):
    """x: (B, in_size) float32. Returns (B, out_dim) float32."""
    generation = _chip_generation()
    x_pad = _pad_input(x, params)
    B = x_pad.shape[0]

    # Generation-specific tiled variant: recompute on the strong-MXU chips,
    # bf16 h2 store on v5e where recompute would flip the kernel compute-bound.
    if variant is None:
        variant = "h2bf16" if generation == "v5e" else "recompute"

    # v7x: both TensorCores + >=3-4 grid steps per core; lower threshold so
    # mid-size batches don't run the single-core ungridded fused kernel.
    if generation == "v7x":
        tiled_min, candidates, min_tiles = 256, (512, 256, 128, 64, 32), 8
    else:
        tiled_min, candidates, min_tiles = 1024, (2048, 1024, 512, 256, 128), 4

    if block_b is None and B >= tiled_min:
        for cand in candidates:
            if pl.cdiv(B, cand) >= min_tiles:
                block_b = cand
                break
        if block_b is None:
            block_b = candidates[-1]

    if block_b is not None and pl.cdiv(B, block_b) >= 2:
        y = _forward_tiled(x_pad, params, block_b, variant, generation)
    else:
        y = _forward_fused(x_pad, params, generation)
    return y[:B, :out_dim]


# --------------------------------------------------------------------------
# Parameters & reference
# --------------------------------------------------------------------------

def init_params(key, in_size, output_shape):
    """PyTorch-like uniform fan-in init; weights bf16, biases/BN params f32.

    Input/output feature dims are zero-padded up to multiples of 128 lanes for
    lane-dense loads/stores (padding is mathematically inert).
    """
    in_pad = _round_up(in_size, 128)
    out_pad = _round_up(output_shape, 128)
    dims = [(in_size, 256, in_pad, 256),
            (256, 512, 256, 512),
            (512, 256, 512, 256),
            (256, output_shape, 256, out_pad)]
    params = {}
    for idx, (fan_in, fan_out, rows_pad, cols_pad) in enumerate(dims, start=1):
        key, kw, kb = jax.random.split(key, 3)
        bound = 1.0 / (fan_in ** 0.5)
        w = jax.random.uniform(kw, (fan_in, fan_out), jnp.float32, -bound, bound)
        b = jax.random.uniform(kb, (1, fan_out), jnp.float32, -bound, bound)
        w = jnp.pad(w, ((0, rows_pad - fan_in), (0, cols_pad - fan_out)))
        b = jnp.pad(b, ((0, 0), (0, cols_pad - fan_out)))
        params[f"w{idx}"] = w.astype(jnp.bfloat16)   # MXU operand dtype
        params[f"b{idx}"] = b                        # biases stay f32
    params["gamma"] = jnp.ones((1, 512), jnp.float32)
    params["beta"] = jnp.zeros((1, 512), jnp.float32)
    return params


def _reference_forward(x, params, out_dim, *, h2_bf16=False):
    """Pure-JAX reference mirroring the kernel's mixed precision
    (bf16 matmul operands, f32 accumulation, f32 BatchNorm stats)."""
    bf16 = jnp.bfloat16
    x_pad = _pad_input(x, params)

    def mm(a, w):
        return jnp.dot(a.astype(bf16), w.astype(bf16),
                       preferred_element_type=jnp.float32)

    h1 = jnp.maximum(mm(x_pad, params["w1"]) + params["b1"], 0.0)
    h2 = mm(h1, params["w2"]) + params["b2"]
    mean = jnp.mean(h2, axis=0, keepdims=True)
    var = jnp.mean((h2 - mean) ** 2, axis=0, keepdims=True)
    scale = params["gamma"] * jax.lax.rsqrt(var + BN_EPS)
    shift = params["beta"] - mean * scale
    if h2_bf16:  # mirror the v5e tiled variant's bf16 h2 round trip
        h2 = h2.astype(bf16).astype(jnp.float32)
    h2 = jnp.maximum(h2 * scale + shift, 0.0)
    h3 = jnp.maximum(mm(h2, params["w3"]) + params["b3"], 0.0)
    y = mm(h3, params["w4"]) + params["b4"]
    return y[:, :out_dim]


# --------------------------------------------------------------------------
# Demo / correctness check
# --------------------------------------------------------------------------

if __name__ == "__main__":
    in_size = 32
    output_shape = 64

    key = jax.random.PRNGKey(0)
    key, kx = jax.random.split(key)
    params = init_params(key, in_size, output_shape)

    # 1) Small batch -> single fused whole-batch kernel.
    x_small = jax.random.normal(kx, (8, in_size), jnp.float32)
    out_small = jax.block_until_ready(generator_forward(x_small, params, output_shape))
    ref_small = _reference_forward(x_small, params, output_shape)
    assert out_small.shape == (8, output_shape)
    assert jnp.allclose(out_small, ref_small, atol=5e-3, rtol=5e-3), \
        "fused-path mismatch vs reference"

    # 2) Non-multiple-of-tile batch -> tiled recompute path with masked tail.
    key, kx2 = jax.random.split(key)
    x_mid = jax.random.normal(kx2, (500, in_size), jnp.float32)
    out_rc = jax.block_until_ready(
        generator_forward(x_mid, params, output_shape, block_b=128,
                          variant="recompute"))
    ref_rc = _reference_forward(x_mid, params, output_shape)
    assert out_rc.shape == (500, output_shape)
    assert jnp.allclose(out_rc, ref_rc, atol=5e-3, rtol=5e-3), \
        "tiled recompute-path mismatch vs reference"

    # 3) Tiled bf16-h2 (v5e) variant.
    key, kx3 = jax.random.split(key)
    x_big = jax.random.normal(kx3, (512, in_size), jnp.float32)
    out_bf = jax.block_until_ready(
        generator_forward(x_big, params, output_shape, block_b=128,
                          variant="h2bf16"))
    ref_bf = _reference_forward(x_big, params, output_shape, h2_bf16=True)
    assert out_bf.shape == (512, output_shape)
    assert jnp.allclose(out_bf, ref_bf, atol=2e-2, rtol=2e-2), \
        "tiled bf16-h2-path mismatch vs reference"

    print("KERNEL_OK")
</pallas_src>

<mosaic_0001>
module attributes {stable_mosaic.version = 11 : i64} {
  func.func @_generator_fused_kernel(%arg0: memref<8x128xf32, #tpu.memory_space<vmem>>, %arg1: memref<128x256xbf16, #tpu.memory_space<vmem>>, %arg2: memref<1x256xf32, #tpu.memory_space<vmem>>, %arg3: memref<256x512xbf16, #tpu.memory_space<vmem>>, %arg4: memref<1x512xf32, #tpu.memory_space<vmem>>, %arg5: memref<1x512xf32, #tpu.memory_space<vmem>>, %arg6: memref<1x512xf32, #tpu.memory_space<vmem>>, %arg7: memref<512x256xbf16, #tpu.memory_space<vmem>>, %arg8: memref<1x256xf32, #tpu.memory_space<vmem>>, %arg9: memref<256x128xbf16, #tpu.memory_space<vmem>>, %arg10: memref<1x128xf32, #tpu.memory_space<vmem>>, %arg11: memref<8x128xf32, #tpu.memory_space<vmem>>) attributes {dimension_semantics = [], scalar_prefetch = 0 : i64, scratch_operands = 0 : i64, tpu.core_type = #tpu.core_type<tc>} {
    %c0 = arith.constant 0 : index
    %c0_0 = arith.constant 0 : index
    %0 = vector.load %arg0[%c0, %c0_0] : memref<8x128xf32, #tpu.memory_space<vmem>>, vector<8x128xf32>
    %1 = arith.truncf %0 : vector<8x128xf32> to vector<8x128xbf16>
    %c0_1 = arith.constant 0 : index
    %c0_2 = arith.constant 0 : index
    %2 = vector.load %arg1[%c0_1, %c0_2] : memref<128x256xbf16, #tpu.memory_space<vmem>>, vector<128x256xbf16>
    %cst = arith.constant dense<0.000000e+00> : vector<8x256xf32>
    %3 = tpu.matmul %1, %2, %cst {dimension_numbers = #tpu.dot_dimension_numbers<[1], [0], [0], [1], [0, 0, 1, 1], [], []>} : vector<8x128xbf16>, vector<128x256xbf16>, vector<8x256xf32> -> vector<8x256xf32>
    %c0_3 = arith.constant 0 : index
    %c0_4 = arith.constant 0 : index
    %4 = vector.load %arg2[%c0_3, %c0_4] : memref<1x256xf32, #tpu.memory_space<vmem>>, vector<1x256xf32>
    %5 = vector.broadcast %4 : vector<1x256xf32> to vector<8x256xf32>
    %6 = arith.addf %3, %5 : vector<8x256xf32>
    %cst_5 = arith.constant 0.000000e+00 : f32
    %7 = vector.broadcast %cst_5 : f32 to vector<8x256xf32>
    %8 = arith.maximumf %6, %7 : vector<8x256xf32>
    %9 = arith.truncf %8 : vector<8x256xf32> to vector<8x256xbf16>
    %c0_6 = arith.constant 0 : index
    %c0_7 = arith.constant 0 : index
    %10 = vector.load %arg3[%c0_6, %c0_7] : memref<256x512xbf16, #tpu.memory_space<vmem>>, vector<256x512xbf16>
    %cst_8 = arith.constant dense<0.000000e+00> : vector<8x512xf32>
    %11 = tpu.matmul %9, %10, %cst_8 {dimension_numbers = #tpu.dot_dimension_numbers<[1], [0], [0], [1], [0, 0, 1, 1], [], []>} : vector<8x256xbf16>, vector<256x512xbf16>, vector<8x512xf32> -> vector<8x512xf32>
    %c0_9 = arith.constant 0 : index
    %c0_10 = arith.constant 0 : index
    %12 = vector.load %arg4[%c0_9, %c0_10] : memref<1x512xf32, #tpu.memory_space<vmem>>, vector<1x512xf32>
    %13 = vector.broadcast %12 : vector<1x512xf32> to vector<8x512xf32>
    %14 = arith.addf %11, %13 : vector<8x512xf32>
    %cst_11 = arith.constant dense<0.000000e+00> : vector<512xf32>
    %15 = vector.multi_reduction <add>, %14, %cst_11 [0] : vector<8x512xf32> to vector<512xf32>
    %16 = vector.shape_cast %15 : vector<512xf32> to vector<1x512xf32>
    %cst_12 = arith.constant 8.000000e+00 : f32
    %17 = vector.broadcast %cst_12 : f32 to vector<1x512xf32>
    %18 = arith.divf %16, %17 : vector<1x512xf32>
    %19 = vector.broadcast %18 : vector<1x512xf32> to vector<8x512xf32>
    %20 = arith.subf %14, %19 : vector<8x512xf32>
    %21 = arith.mulf %20, %20 : vector<8x512xf32>
    %cst_13 = arith.constant dense<0.000000e+00> : vector<512xf32>
    %22 = vector.multi_reduction <add>, %21, %cst_13 [0] : vector<8x512xf32> to vector<512xf32>
    %23 = vector.shape_cast %22 : vector<512xf32> to vector<1x512xf32>
    %cst_14 = arith.constant 8.000000e+00 : f32
    %24 = vector.broadcast %cst_14 : f32 to vector<1x512xf32>
    %25 = arith.divf %23, %24 : vector<1x512xf32>
    %c0_15 = arith.constant 0 : index
    %c0_16 = arith.constant 0 : index
    %26 = vector.load %arg5[%c0_15, %c0_16] : memref<1x512xf32, #tpu.memory_space<vmem>>, vector<1x512xf32>
    %cst_17 = arith.constant 9.99999974E-6 : f32
    %27 = vector.broadcast %cst_17 : f32 to vector<1x512xf32>
    %28 = arith.addf %25, %27 : vector<1x512xf32>
    %29 = math.rsqrt %28 : vector<1x512xf32>
    %30 = arith.mulf %26, %29 : vector<1x512xf32>
    %c0_18 = arith.constant 0 : index
    %c0_19 = arith.constant 0 : index
    %31 = vector.load %arg6[%c0_18, %c0_19] : memref<1x512xf32, #tpu.memory_space<vmem>>, vector<1x512xf32>
    %32 = arith.mulf %18, %30 : vector<1x512xf32>
    %33 = arith.subf %31, %32 : vector<1x512xf32>
    %34 = vector.broadcast %30 : vector<1x512xf32> to vector<8x512xf32>
    %35 = arith.mulf %14, %34 : vector<8x512xf32>
    %36 = vector.broadcast %33 : vector<1x512xf32> to vector<8x512xf32>
    %37 = arith.addf %35, %36 : vector<8x512xf32>
    %cst_20 = arith.constant 0.000000e+00 : f32
    %38 = vector.broadcast %cst_20 : f32 to vector<8x512xf32>
    %39 = arith.maximumf %37, %38 : vector<8x512xf32>
    %40 = arith.truncf %39 : vector<8x512xf32> to vector<8x512xbf16>
    %c0_21 = arith.constant 0 : index
    %c0_22 = arith.constant 0 : index
    %41 = vector.load %arg7[%c0_21, %c0_22] : memref<512x256xbf16, #tpu.memory_space<vmem>>, vector<512x256xbf16>
    %cst_23 = arith.constant dense<0.000000e+00> : vector<8x256xf32>
    %42 = tpu.matmul %40, %41, %cst_23 {dimension_numbers = #tpu.dot_dimension_numbers<[1], [0], [0], [1], [0, 0, 1, 1], [], []>} : vector<8x512xbf16>, vector<512x256xbf16>, vector<8x256xf32> -> vector<8x256xf32>
    %c0_24 = arith.constant 0 : index
    %c0_25 = arith.constant 0 : index
    %43 = vector.load %arg8[%c0_24, %c0_25] : memref<1x256xf32, #tpu.memory_space<vmem>>, vector<1x256xf32>
    %44 = vector.broadcast %43 : vector<1x256xf32> to vector<8x256xf32>
    %45 = arith.addf %42, %44 : vector<8x256xf32>
    %cst_26 = arith.constant 0.000000e+00 : f32
    %46 = vector.broadcast %cst_26 : f32 to vector<8x256xf32>
    %47 = arith.maximumf %45, %46 : vector<8x256xf32>
    %48 = arith.truncf %47 : vector<8x256xf32> to vector<8x256xbf16>
    %c0_27 = arith.constant 0 : index
    %c0_28 = arith.constant 0 : index
    %49 = vector.load %arg9[%c0_27, %c0_28] : memref<256x128xbf16, #tpu.memory_space<vmem>>, vector<256x128xbf16>
    %cst_29 = arith.constant dense<0.000000e+00> : vector<8x128xf32>
    %50 = tpu.matmul %48, %49, %cst_29 {dimension_numbers = #tpu.dot_dimension_numbers<[1], [0], [0], [1], [0, 0, 1, 1], [], []>} : vector<8x256xbf16>, vector<256x128xbf16>, vector<8x128xf32> -> vector<8x128xf32>
    %c0_30 = arith.constant 0 : index
    %c0_31 = arith.constant 0 : index
    %51 = vector.load %arg10[%c0_30, %c0_31] : memref<1x128xf32, #tpu.memory_space<vmem>>, vector<1x128xf32>
    %52 = vector.broadcast %51 : vector<1x128xf32> to vector<8x128xf32>
    %53 = arith.addf %50, %52 : vector<8x128xf32>
    %c0_32 = arith.constant 0 : index
    %c0_33 = arith.constant 0 : index
    %54 = vector.load %arg11[%c0_32, %c0_33] : memref<8x128xf32, #tpu.memory_space<vmem>>, vector<8x128xf32>
    tpu.vector_store %arg11[%c0_32, %c0_33], %53 {strides = array<i32>} : memref<8x128xf32, #tpu.memory_space<vmem>>, vector<8x128xf32>,
    return
  }
}

</mosaic_0001>

<bundles_post_ra>
// kernel: tpu_custom_call.1
= control target key start
LH: loop header
LB: loop body
LE: loop exit
PB: predicated region body
PF: predicated region fallthrough
CT: control target
= control target key end

     0   :  { %16 = vsyncpa [#allocation3], 0  ;;  %s2443_s0 = inlined_call_operand.hbm [shape: f32[8,128], index: 0, kind: input, shape index: {}]   ;;  %s2444_s1 = inlined_call_operand.hbm [shape: bf16[128,256], index: 1, kind: input, shape index: {}]   ;;  %s2445_s2 = inlined_call_operand.hbm [shape: f32[1,256], index: 2, kind: input, shape index: {}]   ;;  %s2446_s3 = inlined_call_operand.hbm [shape: bf16[256,512], index: 3, kind: input, shape index: {}]   ;;  %s2447_s4 = inlined_call_operand.vmem [shape: f32[1,512], index: 4, kind: input, shape index: {}]   ;;  %s2448_s5 = inlined_call_operand.vmem [shape: f32[1,512], index: 5, kind: input, shape index: {}]   ;;  %s2449_s6 = inlined_call_operand.hbm [shape: f32[1,512], index: 6, kind: input, shape index: {}]   ;;  %s2450_s7 = inlined_call_operand.hbm [shape: bf16[512,256], index: 7, kind: input, shape index: {}]   ;;  %s2451_s8 = inlined_call_operand.vmem [shape: f32[1,256], index: 8, kind: input, shape index: {}]   ;;  %s2452_s9 = inlined_call_operand.hbm [shape: bf16[256,128], index: 9, kind: input, shape index: {}]   ;;  %s2453_s10 = inlined_call_operand.vmem [shape: f32[1,128], index: 10, kind: input, shape index: {}]   ;;  %s2454_s11 = inlined_call_operand.hbm [shape: f32[8,128], index: 11, kind: output, shape index: {}]  }
   0x1   :  { %17 = vsyncpa [#allocation6], 0 }
   0x2   :  { %18 = vsyncpa [#allocation9], 0 }
   0x3   :  { %19 = vsyncpa [#allocation12], 0 }
   0x4   :  { %20 = vsyncpa [#allocation4], 0  ;;  %s2254_s17 = smov [#allocation5]  }
   0x5   :  { %s36_s18 = sshll.u32 %s2254_s17, 4  ;;  %s37_s18 = int_to_ptr.vmem [resolvable:$true] %s36_s18 }
   0x6   :  { %s2092_s19 = scalar_lea.vmem %s37_s18, 2048  ;;  %p2097_p1 = scmp.lt.s32.totalorder %s37_s18, %s37_s18 }
   0x7   :  { %p2093_p0 = scmp.ne.s32.totalorder %s37_s18, %s2092_s19  ;;  %p2098_p2 = scmp.lt.s32.totalorder %s2092_s19, %s2092_s19 }
   0x9   :  { %p2099_p3 = por %p2098_p2, %p2097_p1 }
   0xb   :  { %p2100_p4 = pnand %p2099_p3, %p2093_p0 }
   0xd   :  { %2103 = shalt.err (!%p2100_p4)
}
   0xe   :  { %s2255_s20 = smov 128   ;;  %s2256_s21 = smov 8  }
   0xf   :  { %42 = dma.hbm_to_vmem [thread:$0]  %s2444_s1, 2048, %s37_s18, [#allocation6], %s2255_s20, %s2255_s20, %s2256_s21  }
  0x10   :  { %s2257_s24 = smov [#allocation8]  }
  0x11   :  { %s58_s25 = sshll.u32 %s2257_s24, 4  ;;  %s59_s25 = int_to_ptr.vmem [resolvable:$true] %s58_s25 }
  0x12   :  { %s2112_s26 = scalar_lea.vmem %s59_s25, 8192  ;;  %p2117_p6 = scmp.lt.s32.totalorder %s59_s25, %s59_s25 }
  0x13   :  { %p2113_p5 = scmp.ne.s32.totalorder %s59_s25, %s2112_s26  ;;  %p2118_p7 = scmp.lt.s32.totalorder %s2112_s26, %s2112_s26 }
  0x15   :  { %p2119_p8 = por %p2118_p7, %p2117_p6 }
  0x17   :  { %p2120_p9 = pnand %p2119_p8, %p2113_p5 }
  0x19   :  { %2123 = shalt.err (!%p2120_p9)
}
  0x1a   :  { %s2258_s27 = smov 256   ;;  %s2259_s28 = smov 16  }
  0x1b   :  { %64 = dma.hbm_to_vmem [thread:$0]  %s2446_s3, 8192, %s59_s25, [#allocation9], %s2258_s27, %s2258_s27, %s2259_s28  }
  0x1c   :  { %s2260_s12 = smov [#allocation11]   ;;  %s2261_s14 = smov [#allocation2]  }
  0x1d   :  { %s84_s13 = sshll.u32 %s2260_s12, 4  ;;  %s27_s1 = sshll.u32 %s2261_s14, 4  ;;  %s85_s13 = int_to_ptr.vmem [resolvable:$true] %s84_s13  ;;  %s28_s1 = int_to_ptr.vmem [resolvable:$true] %s27_s1 }
  0x1e   :  { %s2132_s15 = scalar_lea.vmem %s85_s13, 8192  ;;  %p2137_p11 = scmp.lt.s32.totalorder %s85_s13, %s85_s13 }
  0x1f   :  { %p2133_p10 = scmp.ne.s32.totalorder %s85_s13, %s2132_s15  ;;  %p2138_p12 = scmp.lt.s32.totalorder %s2132_s15, %s2132_s15 }
  0x21   :  { %p2139_p13 = por %p2138_p12, %p2137_p11 }
  0x23   :  { %p2140_p0 = pnand %p2139_p13, %p2133_p10 }
  0x25   :  { %2143 = shalt.err (!%p2140_p0)
}
  0x26   :  { %90 = dma.hbm_to_vmem [thread:$0]  %s2450_s7, 8192, %s85_s13, [#allocation12], %s2255_s20, %s2255_s20, %s2256_s21  }
  0x27   :  { %s2152_s3 = scalar_lea.vmem %s28_s1, 128  ;;  %p2157_p2 = scmp.lt.s32.totalorder %s28_s1, %s28_s1 }
  0x28   :  { %p2153_p1 = scmp.ne.s32.totalorder %s28_s1, %s2152_s3  ;;  %p2158_p3 = scmp.lt.s32.totalorder %s2152_s3, %s2152_s3 }
  0x2a   :  { %p2159_p4 = por %p2158_p3, %p2157_p2 }
  0x2c   :  { %p2160_p5 = pnand %p2159_p4, %p2153_p1 }
  0x2e   :  { %2163 = shalt.err (!%p2160_p5)
}
  0x2f   :  { %30 = dma.hbm_to_vmem [thread:$0]  %s2443_s0, 128, %s28_s1, [#allocation3]  }
  0x30   :  { %s2262_s22 = smov [#allocation7]   ;;  %s2263_s24 = smov [#allocation10]  }
  0x31   :  { %s49_s23 = sshll.u32 %s2262_s22, 4  ;;  %s75_s25 = sshll.u32 %s2263_s24, 4  ;;  %s50_s23 = int_to_ptr.vmem [resolvable:$true] %s49_s23  ;;  %s76_s25 = int_to_ptr.vmem [resolvable:$true] %s75_s25 }
  0x32   :  { %s2172_s26 = scalar_lea.vmem %s50_s23, 32  ;;  %p2177_p7 = scmp.lt.s32.totalorder %s50_s23, %s50_s23 }
  0x33   :  { %p2173_p6 = scmp.ne.s32.totalorder %s50_s23, %s2172_s26  ;;  %p2178_p8 = scmp.lt.s32.totalorder %s2172_s26, %s2172_s26 }
  0x35   :  { %p2179_p9 = por %p2178_p8, %p2177_p7 }
  0x37   :  { %p2180_p10 = pnand %p2179_p9, %p2173_p6 }
  0x39   :  { %2183 = shalt.err (!%p2180_p10)
}
  0x3a   :  { %52 = dma.hbm_to_vmem [thread:$0]  %s2445_s2, 32, %s50_s23, [#allocation6]  }
  0x3b   :  { %s2192_s21 = scalar_lea.vmem %s76_s25, 64  ;;  %p2197_p12 = scmp.lt.s32.totalorder %s76_s25, %s76_s25 }
  0x3c   :  { %p2193_p11 = scmp.ne.s32.totalorder %s76_s25, %s2192_s21  ;;  %p2198_p13 = scmp.lt.s32.totalorder %s2192_s21, %s2192_s21 }
  0x3e   :  { %p2199_p0 = por %p2198_p13, %p2197_p12 }
  0x40   :  { %p2200_p1 = pnand %p2199_p0, %p2193_p11 }
  0x42   :  { %2203 = shalt.err (!%p2200_p1)
}
  0x43   :  { %78 = dma.hbm_to_vmem [thread:$0]  %s2449_s6, 64, %s76_s25, [#allocation9]  }
  0x44   :  { %s2264_s28 = smov [#allocation13]  }
  0x45   :  { %s98_s29 = sshll.u32 %s2264_s28, 4  ;;  %s99_s29 = int_to_ptr.vmem [resolvable:$true] %s98_s29 }
  0x46   :  { %s2212_s30 = scalar_lea.vmem %s99_s29, 2048  ;;  %p2217_p3 = scmp.lt.s32.totalorder %s99_s29, %s99_s29 }
  0x47   :  { %p2213_p2 = scmp.ne.s32.totalorder %s99_s29, %s2212_s30  ;;  %p2218_p4 = scmp.lt.s32.totalorder %s2212_s30, %s2212_s30 }
  0x49   :  { %p2219_p5 = por %p2218_p4, %p2217_p3 }
  0x4b   :  { %p2220_p6 = pnand %p2219_p5, %p2213_p2 }
  0x4d   :  { %2223 = shalt.err (!%p2220_p6)
}
  0x4e   :  { %s2265_s2 = smov 64   ;;  %s2266_s12 = smov 4  }
  0x4f   :  { %104 = dma.hbm_to_vmem [thread:$0]  %s2452_s9, 2048, %s99_s29, [#allocation12], %s2265_s2, %s2265_s2, %s2266_s12  }
  0x50   :  { %2244 = dma.done.wait [#allocation3], 128  }
  0x51   :  { %2245 = vsyncadd [#allocation3], 4294967168 }
  0x52   :  { %2246 = dma.done.wait [#allocation6], 2080  }
  0x53   :  { %2247 = vsyncadd [#allocation6], 4294965216 }
  0x54   :  { %2248 = dma.done.wait [#allocation9], 8256  }
  0x55   :  { %2249 = vsyncadd [#allocation9], 4294959040 }
  0x56   :  { %2250 = dma.done.wait [#allocation12], 10240  }
  0x57   :  { %2251 = vsyncadd [#allocation12], 4294957056  ;;  %v2267_v0 = vmov 0   ;;  %v1844_v1 = vld [vmem:[#allocation5 + $0x74] ss:$8 sps:$4 sm:$0xff]   ;;  %s2269_s17 = smov [#allocation14]  }
  0x58   :  { %271 = vmatprep.mubr.bf16.mxu0 %v2267_v0  ;;  %v1846_v2 = vld [vmem:[#allocation5 + $0x70] ss:$8 sps:$4 sm:$0xff]   ;;  %239 = vmatprep.subr.bf16.mxu0 %v1844_v1  ;;  %v1847_v3 = vld [vmem:[#allocation5 + $0x64] ss:$8 sps:$4 sm:$0xff]   ;;  %v1849_v4 = vld [vmem:[#allocation5 + $0x60] ss:$8 sps:$4 sm:$0xff]  }
  0x59   :  { %240 = vmatpush1.bf16.msra.mxu0 %v1846_v2  ;;  %v1850_v5 = vld [vmem:[#allocation5 + $0x54] ss:$8 sps:$4 sm:$0xff]   ;;  %v1852_v6 = vld [vmem:[#allocation5 + $0x50] ss:$8 sps:$4 sm:$0xff]   ;;  %v1853_v7 = vld [vmem:[#allocation5 + $0x44] ss:$8 sps:$4 sm:$0xff]  }
  0x5a   :  { %241 = vmatprep.subr.bf16.mxu0 %v1847_v3  ;;  %v1855_v8 = vld [vmem:[#allocation5 + $0x40] ss:$8 sps:$4 sm:$0xff]   ;;  %v1856_v10 = vld [vmem:[#allocation5 + $0x34] ss:$8 sps:$4 sm:$0xff]   ;;  %v1858_v13 = vld [vmem:[#allocation5 + $0x30] ss:$8 sps:$4 sm:$0xff]  }
  0x5b   :  { %v1868_v9 = vld [vmem:[#allocation8 + $0xe4] ss:$16 sps:$4 sm:$0xff]   ;;  %v1873_v11 = vld [vmem:[#allocation8 + $0xe0] ss:$16 sps:$4 sm:$0xff]   ;;  %v1872_v27 = vld [vmem:[#allocation8 + $0xec] ss:$16 sps:$4 sm:$0xff]  }
  0x5c   :  { %690 = vmatprep.subr.bf16.mxu1 %v1868_v9  ;;  %v1874_v12 = vld [vmem:[#allocation8 + $0xc4] ss:$16 sps:$4 sm:$0xff]   ;;  %v1879_v15 = vld [vmem:[#allocation8 + $0xc0] ss:$16 sps:$4 sm:$0xff]   ;;  %v1870_v31 = vld [vmem:[#allocation8 + $0xe8] ss:$16 sps:$4 sm:$0xff]  }
  0x5d   :  { %242 = vmatpush1.bf16.msra.mxu0 %v1849_v4  ;;  %v1859_v14 = vld [vmem:[#allocation5 + $0x24] ss:$8 sps:$4 sm:$0xff]   ;;  %691 = vmatpush1.bf16.msra.mxu1 %v1873_v11  ;;  %v1861_v17 = vld [vmem:[#allocation5 + $0x20] ss:$8 sps:$4 sm:$0xff]   ;;  %v1862_v18 = vld [vmem:[#allocation5 + $0x14] ss:$8 sps:$4 sm:$0xff]  }
  0x5e   :  { %243 = vmatprep.subr.bf16.mxu0 %v1850_v5  ;;  %692 = vmatprep.subr.bf16.mxu1 %v1874_v12  ;;  %v1880_v16 = vld [vmem:[#allocation8 + $0xa4] ss:$16 sps:$4 sm:$0xff]   ;;  %v1885_v19 = vld [vmem:[#allocation8 + $0xa0] ss:$16 sps:$4 sm:$0xff]   ;;  %v1878_v32 = vld [vmem:[#allocation8 + $0xcc] ss:$16 sps:$4 sm:$0xff]  }
  0x5f   :  { %v1886_v20 = vld [vmem:[#allocation8 + $0x84] ss:$16 sps:$4 sm:$0xff]   ;;  %v1891_v23 = vld [vmem:[#allocation8 + $0x80] ss:$16 sps:$4 sm:$0xff]   ;;  %v1876_v35 = vld [vmem:[#allocation8 + $0xc8] ss:$16 sps:$4 sm:$0xff]  }
  0x60   :  { %v1864_v21 = vld [vmem:[#allocation5 + $0x10] ss:$8 sps:$4 sm:$0xff]   ;;  %v1865_v22 = vld [vmem:[#allocation5 + $0x4] ss:$8 sps:$4 sm:$0xff]   ;;  %v1867_v25 = vld [vmem:[#allocation5] ss:$8 sps:$4 sm:$0xff]  }
  0x61   :  { %244 = vmatpush1.bf16.msra.mxu0 %v1852_v6  ;;  %693 = vmatpush1.bf16.msra.mxu1 %v1879_v15  ;;  %v1892_v24 = vld [vmem:[#allocation8 + $0x64] ss:$16 sps:$4 sm:$0xff]   ;;  %v1897_v28 = vld [vmem:[#allocation8 + $0x60] ss:$16 sps:$4 sm:$0xff]   ;;  %v1884_v36 = vld [vmem:[#allocation8 + $0xac] ss:$16 sps:$4 sm:$0xff]  }
  0x62   :  { %245 = vmatprep.subr.bf16.mxu0 %v1853_v7  ;;  %694 = vmatprep.subr.bf16.mxu1 %v1880_v16  ;;  %v129_v26 = vld [vmem:[#allocation2] sm:$0xff]  ;;  %v1903_v33 = vld [vmem:[#allocation8 + $0x40] ss:$16 sps:$4 sm:$0xff]   ;;  %s1633_s3 = sshll.u32 %s2269_s17, 4  ;;  %s1634_s3 = int_to_ptr.vmem [resolvable:$true] %s1633_s3 }
  0x63   :  { %v1898_v29 = vld [vmem:[#allocation8 + $0x44] ss:$16 sps:$4 sm:$0xff]   ;;  %v130_v30 = vpack.c.bf16 %v129_v26, %v129_v26  ;;  %v1909_v37 = vld [vmem:[#allocation8 + $0x20] ss:$16 sps:$4 sm:$0xff]   ;;  %v1882_v39 = vld [vmem:[#allocation8 + $0xa8] ss:$16 sps:$4 sm:$0xff]   ;;  %p2229_p8 = scmp.lt.s32.totalorder %s1634_s3, %s1634_s3 }
  0x64   :  { %v1904_v34 = vld [vmem:[#allocation8 + $0x24] ss:$16 sps:$4 sm:$0xff]   ;;  %v1890_v40 = vld [vmem:[#allocation8 + $0x8c] ss:$16 sps:$4 sm:$0xff]   ;;  %v1915_v41 = vld [vmem:[#allocation8] ss:$16 sps:$4 sm:$0xff]  }
  0x65   :  { %246 = vmatpush1.bf16.msra.mxu0 %v1855_v8  ;;  %695 = vmatpush1.bf16.msra.mxu1 %v1885_v19  ;;  %v1910_v38 = vld [vmem:[#allocation8 + $0x4] ss:$16 sps:$4 sm:$0xff]   ;;  %v1888_v43 = vld [vmem:[#allocation8 + $0x88] ss:$16 sps:$4 sm:$0xff]   ;;  %v1896_v44 = vld [vmem:[#allocation8 + $0x6c] ss:$16 sps:$4 sm:$0xff]   ;;  %v149_v19 = vlaneseq }
  0x66   :  { %247 = vmatprep.subr.bf16.mxu0 %v1856_v10  ;;  %696 = vmatprep.subr.bf16.mxu1 %v1886_v20  ;;  %v1916_v42 = vld [vmem:[#allocation8 + $0x1e4] ss:$16 sps:$4 sm:$0xff]   ;;  %v1921_v45 = vld [vmem:[#allocation8 + $0x1e0] ss:$16 sps:$4 sm:$0xff]   ;;  %v1894_v47 = vld [vmem:[#allocation8 + $0x68] ss:$16 sps:$4 sm:$0xff]  }
  0x67   :  { %v1922_v46 = vld [vmem:[#allocation8 + $0x1c4] ss:$16 sps:$4 sm:$0xff]   ;;  %v1927_v48 = vld [vmem:[#allocation8 + $0x1c0] ss:$16 sps:$4 sm:$0xff]   ;;  %v1902_v49 = vld [vmem:[#allocation8 + $0x4c] ss:$16 sps:$4 sm:$0xff]  }
  0x68   :  { %v1928_v50 = vld [vmem:[#allocation8 + $0x1a4] ss:$16 sps:$4 sm:$0xff]   ;;  %v1900_v51 = vld [vmem:[#allocation8 + $0x48] ss:$16 sps:$4 sm:$0xff]   ;;  %v1933_v52 = vld [vmem:[#allocation8 + $0x1a0] ss:$16 sps:$4 sm:$0xff]  }
  0x69   :  { %248 = vmatpush1.bf16.msra.mxu0 %v1858_v13  ;;  %697 = vmatpush1.bf16.msra.mxu1 %v1891_v23  ;;  %v1908_v53 = vld [vmem:[#allocation8 + $0x2c] ss:$16 sps:$4 sm:$0xff]   ;;  %v1934_v54 = vld [vmem:[#allocation8 + $0x184] ss:$16 sps:$4 sm:$0xff]   ;;  %v1906_v55 = vld [vmem:[#allocation8 + $0x28] ss:$16 sps:$4 sm:$0xff]  }
  0x6a   :  { %249 = vmatprep.subr.bf16.mxu0 %v1859_v14  ;;  %698 = vmatprep.subr.bf16.mxu1 %v1892_v24  ;;  %v1939_v56 = vld [vmem:[#allocation8 + $0x180] ss:$16 sps:$4 sm:$0xff]   ;;  %v1914_v57 = vld [vmem:[#allocation8 + $0xc] ss:$16 sps:$4 sm:$0xff]   ;;  %v1940_v58 = vld [vmem:[#allocation8 + $0x164] ss:$16 sps:$4 sm:$0xff]  }
  0x6b   :  { %v1912_v59 = vld [vmem:[#allocation8 + $0x8] ss:$16 sps:$4 sm:$0xff]   ;;  %v1945_v60 = vld [vmem:[#allocation8 + $0x160] ss:$16 sps:$4 sm:$0xff]   ;;  %v1920_v61 = vld [vmem:[#allocation8 + $0x1ec] ss:$16 sps:$4 sm:$0xff]  }
  0x6c   :  { %v1946_v62 = vld [vmem:[#allocation8 + $0x144] ss:$16 sps:$4 sm:$0xff]   ;;  %v1918_v63 = vld [vmem:[#allocation8 + $0x1e8] ss:$16 sps:$4 sm:$0xff]   ;;  %v1951_v0 = vld [vmem:[#allocation8 + $0x140] ss:$16 sps:$4 sm:$0xff]  }
  0x6d   :  { %250 = vmatpush1.bf16.msra.mxu0 %v1861_v17  ;;  %699 = vmatpush1.bf16.msra.mxu1 %v1897_v28  ;;  %v1926_v1 = vld [vmem:[#allocation8 + $0x1cc] ss:$16 sps:$4 sm:$0xff]   ;;  %v1924_v2 = vld [vmem:[#allocation8 + $0x1c8] ss:$16 sps:$4 sm:$0xff]   ;;  %v1952_v11 = vld [vmem:[#allocation8 + $0x124] ss:$16 sps:$4 sm:$0xff]  }
  0x6e   :  { %251 = vmatprep.subr.bf16.mxu0 %v1862_v18  ;;  %700 = vmatprep.subr.bf16.mxu1 %v1898_v29  ;;  %v1932_v3 = vld [vmem:[#allocation8 + $0x1ac] ss:$16 sps:$4 sm:$0xff]   ;;  %v1930_v4 = vld [vmem:[#allocation8 + $0x1a8] ss:$16 sps:$4 sm:$0xff]   ;;  %v1957_v14 = vld [vmem:[#allocation8 + $0x120] ss:$16 sps:$4 sm:$0xff]  }
  0x6f   :  { %v1938_v5 = vld [vmem:[#allocation8 + $0x18c] ss:$16 sps:$4 sm:$0xff]   ;;  %v1936_v6 = vld [vmem:[#allocation8 + $0x188] ss:$16 sps:$4 sm:$0xff]   ;;  %v1958_v15 = vld [vmem:[#allocation8 + $0x104] ss:$16 sps:$4 sm:$0xff]  }
  0x70   :  { %v1944_v7 = vld [vmem:[#allocation8 + $0x16c] ss:$16 sps:$4 sm:$0xff]   ;;  %v1942_v8 = vld [vmem:[#allocation8 + $0x168] ss:$16 sps:$4 sm:$0xff]   ;;  %v1963_v18 = vld [vmem:[#allocation8 + $0x100] ss:$16 sps:$4 sm:$0xff]  }
  0x71   :  { %252 = vmatpush1.bf16.msra.mxu0 %v1864_v21  ;;  %701 = vmatpush1.bf16.msra.mxu1 %v1903_v33  ;;  %v1950_v9 = vld [vmem:[#allocation8 + $0x14c] ss:$16 sps:$4 sm:$0xff]   ;;  %v1948_v10 = vld [vmem:[#allocation8 + $0x148] ss:$16 sps:$4 sm:$0xff]   ;;  %v2357_v20 = vshrl.u32 %v149_v19, 7  ;;  %s2224_s18 = scalar_lea.vmem %s1634_s3, 128 }
  0x72   :  { %253 = vmatprep.subr.bf16.mxu0 %v1865_v22  ;;  %702 = vmatprep.subr.bf16.mxu1 %v1904_v34  ;;  %v1956_v12 = vld [vmem:[#allocation8 + $0x12c] ss:$16 sps:$4 sm:$0xff]   ;;  %v1954_v13 = vld [vmem:[#allocation8 + $0x128] ss:$16 sps:$4 sm:$0xff]   ;;  %p2225_p7 = scmp.ne.s32.totalorder %s1634_s3, %s2224_s18  ;;  %p2230_p9 = scmp.lt.s32.totalorder %s2224_s18, %s2224_s18 }
  0x73   :  { %v1962_v16 = vld [vmem:[#allocation8 + $0x10c] ss:$16 sps:$4 sm:$0xff]   ;;  %v1960_v17 = vld [vmem:[#allocation8 + $0x108] ss:$16 sps:$4 sm:$0xff]   ;;  %v2360_v21 = vsub.s32 0, %v2357_v20  ;;  %v2363_v23 = vsub.s32 1, %v2357_v20 }
  0x74   :  { %v147_v22 = vld [vmem:[#allocation7] sm:$0x3]  ;;  %v2033_v19 = vld [vmem:[#allocation11 + $0x1c0] ss:$8 sps:$4 sm:$0xff]   ;;  %p2231_p10 = por %p2230_p9, %p2229_p8 }
  0x75   :  { %254 = vmatpush1.bf16.msra.mxu0 %v1867_v25  ;;  %703 = vmatpush1.bf16.msra.mxu1 %v1909_v37  ;;  %v152_v24 = vrot.slane %v147_v22, %v2360_v21  ;;  %v156_v25 = vrot.slane %v147_v22, %v2363_v23  ;;  %v1969_v37 = vld [vmem:[#allocation11 + $0x174] ss:$8 sps:$4 sm:$0xff]  }
  0x76   :  { %731 = vmatprep.subr.bf16.mxu0 %v1872_v27  ;;  %704 = vmatprep.subr.bf16.mxu1 %v1910_v38  ;;  %v1964_v38 = vld [vmem:[#allocation11 + $0x70] ss:$8 sps:$4 sm:$0xff]   ;;  %v2038_v22 = vld [vmem:[#allocation11 + $0xb4] ss:$8 sps:$4 sm:$0xff]   ;;  %p2232_p11 = pnand %p2231_p10, %p2225_p7 }
  0x78   :  { %272 = vmatmul.mubr.bf16.vlgmr.msra.gmra.mxu0 %v130_v30 }
  0x79   :  { %732 = vmatpush1.bf16.msra.mxu0 %v1870_v31  ;;  %705 = vmatpush1.bf16.msra.mxu1 %v1915_v41  ;;  %v1975_v41 = vld [vmem:[#allocation11 + $0x164] ss:$8 sps:$4 sm:$0xff]  }
  0x7a   :  { %733 = vmatprep.subr.bf16.mxu0 %v1878_v32  ;;  %706 = vmatprep.subr.bf16.mxu1 %v1916_v42  ;;  %v1970_v42 = vld [vmem:[#allocation11 + $0x60] ss:$8 sps:$4 sm:$0xff]  }
  0x7d   :  { %734 = vmatpush1.bf16.msra.mxu0 %v1876_v35  ;;  %707 = vmatpush2.bf16.msra.mxu1 %v1921_v45  ;;  %v1981_v45 = vld [vmem:[#allocation11 + $0x154] ss:$8 sps:$4 sm:$0xff]  }
  0x7e   :  { %735 = vmatprep.subr.bf16.mxu0 %v1884_v36  ;;  %708 = vmatprep.subr.bf16.mxu1 %v1922_v46  ;;  %v1966_v36 = vld [vmem:[#allocation11 + $0x74] ss:$8 sps:$4 sm:$0xff]   ;;  %v1976_v46 = vld [vmem:[#allocation11 + $0x50] ss:$8 sps:$4 sm:$0xff]  }
  0x81   :  { %736 = vmatpush1.bf16.msra.mxu0 %v1882_v39  ;;  %709 = vmatpush2.bf16.msra.mxu1 %v1927_v48  ;;  %v1967_v39 = vld [vmem:[#allocation11 + $0x170] ss:$8 sps:$4 sm:$0xff]   ;;  %v1984_v48 = vld [vmem:[#allocation11 + $0x44] ss:$8 sps:$4 sm:$0xff]  }
  0x82   :  { %737 = vmatprep.subr.bf16.mxu0 %v1890_v40  ;;  %710 = vmatprep.subr.bf16.mxu1 %v1928_v50  ;;  %v1972_v40 = vld [vmem:[#allocation11 + $0x64] ss:$8 sps:$4 sm:$0xff]   ;;  %v1982_v50 = vld [vmem:[#allocation11 + $0x40] ss:$8 sps:$4 sm:$0xff]  }
  0x85   :  { %738 = vmatpush1.bf16.msra.mxu0 %v1888_v43  ;;  %711 = vmatpush2.bf16.msra.mxu1 %v1933_v52  ;;  %v1973_v43 = vld [vmem:[#allocation11 + $0x160] ss:$8 sps:$4 sm:$0xff]   ;;  %v1990_v52 = vld [vmem:[#allocation11 + $0x34] ss:$8 sps:$4 sm:$0xff]  }
  0x86   :  { %739 = vmatprep.subr.bf16.mxu0 %v1896_v44  ;;  %712 = vmatprep.subr.bf16.mxu1 %v1934_v54  ;;  %v1978_v44 = vld [vmem:[#allocation11 + $0x54] ss:$8 sps:$4 sm:$0xff]   ;;  %v1988_v54 = vld [vmem:[#allocation11 + $0x30] ss:$8 sps:$4 sm:$0xff]  }
  0x89   :  { %740 = vmatpush1.bf16.msra.mxu0 %v1894_v47  ;;  %713 = vmatpush2.bf16.msra.mxu1 %v1939_v56  ;;  %v1979_v47 = vld [vmem:[#allocation11 + $0x150] ss:$8 sps:$4 sm:$0xff]   ;;  %v1996_v56 = vld [vmem:[#allocation11 + $0x24] ss:$8 sps:$4 sm:$0xff]  }
  0x8a   :  { %741 = vmatprep.subr.bf16.mxu0 %v1902_v49  ;;  %714 = vmatprep.subr.bf16.mxu1 %v1940_v58  ;;  %v1987_v49 = vld [vmem:[#allocation11 + $0x144] ss:$8 sps:$4 sm:$0xff]   ;;  %v1994_v58 = vld [vmem:[#allocation11 + $0x20] ss:$8 sps:$4 sm:$0xff]  }
  0x8d   :  { %742 = vmatpush1.bf16.msra.mxu0 %v1900_v51  ;;  %715 = vmatpush2.bf16.msra.mxu1 %v1945_v60  ;;  %v1985_v51 = vld [vmem:[#allocation11 + $0x140] ss:$8 sps:$4 sm:$0xff]   ;;  %v2002_v60 = vld [vmem:[#allocation11 + $0x14] ss:$8 sps:$4 sm:$0xff]  }
  0x8e   :  { %743 = vmatprep.subr.bf16.mxu0 %v1908_v53  ;;  %716 = vmatprep.subr.bf16.mxu1 %v1946_v62  ;;  %v1993_v53 = vld [vmem:[#allocation11 + $0x134] ss:$8 sps:$4 sm:$0xff]   ;;  %v2000_v62 = vld [vmem:[#allocation11 + $0x10] ss:$8 sps:$4 sm:$0xff]  }
  0x91   :  { %744 = vmatpush1.bf16.msra.mxu0 %v1906_v55  ;;  %717 = vmatpush2.bf16.msra.mxu1 %v1951_v0  ;;  %v1991_v55 = vld [vmem:[#allocation11 + $0x130] ss:$8 sps:$4 sm:$0xff]   ;;  %v2008_v0 = vld [vmem:[#allocation11 + $0x4] ss:$8 sps:$4 sm:$0xff]  }
  0x92   :  { %745 = vmatprep.subr.bf16.mxu0 %v1914_v57  ;;  %718 = vmatprep.subr.bf16.mxu1 %v1952_v11  ;;  %v1999_v57 = vld [vmem:[#allocation11 + $0x124] ss:$8 sps:$4 sm:$0xff]   ;;  %v2021_v11 = vld [vmem:[#allocation11 + $0x1e0] ss:$8 sps:$4 sm:$0xff]  }
  0x95   :  { %746 = vmatpush1.bf16.msra.mxu0 %v1912_v59  ;;  %719 = vmatpush2.bf16.msra.mxu1 %v1957_v14  ;;  %v1997_v59 = vld [vmem:[#allocation11 + $0x120] ss:$8 sps:$4 sm:$0xff]   ;;  %v2024_v14 = vld [vmem:[#allocation11 + $0xd0] ss:$8 sps:$4 sm:$0xff]  }
  0x96   :  { %747 = vmatprep.subr.bf16.mxu0 %v1920_v61  ;;  %720 = vmatprep.subr.bf16.mxu1 %v1958_v15  ;;  %v2005_v61 = vld [vmem:[#allocation11 + $0x114] ss:$8 sps:$4 sm:$0xff]   ;;  %v2027_v15 = vld [vmem:[#allocation11 + $0x1d0] ss:$8 sps:$4 sm:$0xff]  }
  0x99   :  { %748 = vmatpush2.bf16.msra.mxu0 %v1918_v63  ;;  %721 = vmatpush2.bf16.msra.mxu1 %v1963_v18  ;;  %v2003_v63 = vld [vmem:[#allocation11 + $0x110] ss:$8 sps:$4 sm:$0xff]   ;;  %v2030_v18 = vld [vmem:[#allocation11 + $0xc0] ss:$8 sps:$4 sm:$0xff]  }
  0x9a   :  { %749 = vmatprep.subr.bf16.mxu0 %v1926_v1  ;;  %1365 = vmatprep.subr.bf16.mxu1 %v1966_v36  ;;  %v2011_v1 = vld [vmem:[#allocation11 + $0x104] ss:$8 sps:$4 sm:$0xff]  }
  0x9b   :  { %v2059_v36 = vld [vmem:[#allocation11 + $0x184] ss:$8 sps:$4 sm:$0xff]  }
  0x9d   :  { %750 = vmatpush2.bf16.msra.mxu0 %v1924_v2  ;;  %v2006_v2 = vld [vmem:[#allocation11] ss:$8 sps:$4 sm:$0xff]  }
  0x9e   :  { %751 = vmatprep.subr.bf16.mxu0 %v1932_v3  ;;  %v2009_v3 = vld [vmem:[#allocation11 + $0x100] ss:$8 sps:$4 sm:$0xff]  }
  0xa1   :  { %752 = vmatpush2.bf16.msra.mxu0 %v1930_v4  ;;  %v2014_v4 = vld [vmem:[#allocation11 + $0xf4] ss:$8 sps:$4 sm:$0xff]  }
  0xa2   :  { %753 = vmatprep.subr.bf16.mxu0 %v1938_v5  ;;  %v2017_v5 = vld [vmem:[#allocation11 + $0x1f4] ss:$8 sps:$4 sm:$0xff]  }
  0xa5   :  { %754 = vmatpush2.bf16.msra.mxu0 %v1936_v6  ;;  %v2012_v6 = vld [vmem:[#allocation11 + $0xf0] ss:$8 sps:$4 sm:$0xff]  }
  0xa6   :  { %755 = vmatprep.subr.bf16.mxu0 %v1944_v7  ;;  %v2015_v7 = vld [vmem:[#allocation11 + $0x1f0] ss:$8 sps:$4 sm:$0xff]  }
  0xa9   :  { %756 = vmatpush2.bf16.msra.mxu0 %v1942_v8  ;;  %v2020_v8 = vld [vmem:[#allocation11 + $0xe4] ss:$8 sps:$4 sm:$0xff]  }
  0xaa   :  { %757 = vmatprep.subr.bf16.mxu0 %v1950_v9  ;;  %v2023_v9 = vld [vmem:[#allocation11 + $0x1e4] ss:$8 sps:$4 sm:$0xff]  }
  0xad   :  { %758 = vmatpush2.bf16.msra.mxu0 %v1948_v10  ;;  %v2018_v10 = vld [vmem:[#allocation11 + $0xe0] ss:$8 sps:$4 sm:$0xff]  }
  0xae   :  { %759 = vmatprep.subr.bf16.mxu0 %v1956_v12  ;;  %v2026_v12 = vld [vmem:[#allocation11 + $0xd4] ss:$8 sps:$4 sm:$0xff]  }
  0xb1   :  { %760 = vmatpush2.bf16.msra.mxu0 %v1954_v13  ;;  %v2029_v13 = vld [vmem:[#allocation11 + $0x1d4] ss:$8 sps:$4 sm:$0xff]  }
  0xb2   :  { %761 = vmatprep.subr.bf16.mxu0 %v1962_v16  ;;  %v2032_v16 = vld [vmem:[#allocation11 + $0xc4] ss:$8 sps:$4 sm:$0xff]  }
  0xb5   :  { %762 = vmatpush2.bf16.msra.mxu0 %v1960_v17  ;;  %v2035_v17 = vld [vmem:[#allocation11 + $0x1c4] ss:$8 sps:$4 sm:$0xff]  }
  0xb6   :  { %1406 = vmatprep.subr.bf16.mxu0 %v1969_v37  ;;  %v2054_v37 = vld [vmem:[#allocation11 + $0x80] ss:$8 sps:$4 sm:$0xff]  }
 0x138   :  { %v273_v26 = vpop.f32.mrf.mxu0 }
 0x139   :  { %v274_v27 = vadd.f32 %v273_v26, %v152_v24  ;;  %v2041_v24 = vld [vmem:[#allocation11 + $0x1b4] ss:$8 sps:$4 sm:$0xff]   ;;  %v2039_v26 = vld [vmem:[#allocation11 + $0x1b0] ss:$8 sps:$4 sm:$0xff]  }
 0x13a   :  { %v275_v28 = vpop.f32.mrf.mxu0 }
 0x13b   :  { %v276_v29 = vadd.f32 %v275_v28, %v156_v25  ;;  %v280_v30 = vmax.f32 %v274_v27, 0.0  ;;  %v2036_v25 = vld [vmem:[#allocation11 + $0xb0] ss:$8 sps:$4 sm:$0xff]   ;;  %v2044_v27 = vld [vmem:[#allocation11 + $0xa4] ss:$8 sps:$4 sm:$0xff]  }
 0x13c   :  { %v277_v31 = vpop.f32.mrf.mxu0  ;;  %v2047_v28 = vld [vmem:[#allocation11 + $0x1a4] ss:$8 sps:$4 sm:$0xff]  }
 0x13d   :  { %v281_v32 = vmax.f32 %v276_v29, 0.0  ;;  %v282_v35 = vpack.c.bf16 %v280_v30, %v280_v30  ;;  %v2042_v29 = vld [vmem:[#allocation11 + $0xa0] ss:$8 sps:$4 sm:$0xff]   ;;  %v2050_v31 = vld [vmem:[#allocation11 + $0x94] ss:$8 sps:$4 sm:$0xff]  }
 0x13e   :  { %v278_v33 = vpop.f32.mrf.mxu0  ;;  %v2045_v30 = vld [vmem:[#allocation11 + $0x1a0] ss:$8 sps:$4 sm:$0xff]  }
 0x13f   :  { %v283_v34 = vpack.c.bf16 %v281_v32, %v281_v32  ;;  %v2053_v32 = vld [vmem:[#allocation11 + $0x194] ss:$8 sps:$4 sm:$0xff]   ;;  %v2048_v33 = vld [vmem:[#allocation11 + $0x90] ss:$8 sps:$4 sm:$0xff]  }
 0x141   :  { %722 = vmatprep.mubr.bf16.mxu1 %v283_v34  ;;  %763 = vmatprep.mubr.bf16.mxu0 %v283_v34  ;;  %v2051_v34 = vld [vmem:[#allocation11 + $0x190] ss:$8 sps:$4 sm:$0xff]  }
 0x142   :  { %723 = vmatmul.mubr.bf16.vlgmr.msra.gmra.mxu1 %v282_v35  ;;  %764 = vmatmul.mubr.bf16.vlgmr.msra.gmra.mxu0 %v282_v35  ;;  %v2056_v35 = vld [vmem:[#allocation11 + $0x84] ss:$8 sps:$4 sm:$0xff]  }
 0x143   :  { %1366 = vmatpush1.bf16.msra.mxu1 %v1964_v38  ;;  %1407 = vmatpush1.bf16.msra.mxu0 %v1967_v39  ;;  %v2057_v38 = vld [vmem:[#allocation11 + $0x180] ss:$8 sps:$4 sm:$0xff]   ;;  %v2060_v39 = vld [vmem:[#allocation13 + $0x78] sm:$0xff]  }
 0x144   :  { %1367 = vmatprep.subr.bf16.mxu1 %v1972_v40  ;;  %1408 = vmatprep.subr.bf16.mxu0 %v1975_v41  ;;  %v2368_v40 = vsub.s32 2, %v2357_v20  ;;  %v348_v41 = vld [vmem:[%s2447_s4] sm:$0xf] }
 0x147   :  { %1368 = vmatpush1.bf16.msra.mxu1 %v1970_v42  ;;  %1409 = vmatpush1.bf16.msra.mxu0 %v1973_v43  ;;  %v2374_v42 = vsub.s32 3, %v2357_v20  ;;  %v353_v43 = vrot.slane %v348_v41, %v2360_v21 }
 0x148   :  { %1369 = vmatprep.subr.bf16.mxu1 %v1978_v44  ;;  %1410 = vmatprep.subr.bf16.mxu0 %v1981_v45  ;;  %v361_v44 = vrot.slane %v348_v41, %v2368_v40  ;;  %v357_v45 = vrot.slane %v348_v41, %v2363_v23 }
 0x14b   :  { %1370 = vmatpush1.bf16.msra.mxu1 %v1976_v46  ;;  %1411 = vmatpush1.bf16.msra.mxu0 %v1979_v47  ;;  %v365_v46 = vrot.slane %v348_v41, %v2374_v42 }
 0x14c   :  { %1371 = vmatprep.subr.bf16.mxu1 %v1984_v48  ;;  %1412 = vmatprep.subr.bf16.mxu0 %v1987_v49 }
 0x14f   :  { %1372 = vmatpush1.bf16.msra.mxu1 %v1982_v50  ;;  %1413 = vmatpush1.bf16.msra.mxu0 %v1985_v51 }
 0x150   :  { %1373 = vmatprep.subr.bf16.mxu1 %v1990_v52  ;;  %1414 = vmatprep.subr.bf16.mxu0 %v1993_v53 }
 0x153   :  { %1374 = vmatpush1.bf16.msra.mxu1 %v1988_v54  ;;  %1415 = vmatpush1.bf16.msra.mxu0 %v1991_v55 }
 0x154   :  { %1375 = vmatprep.subr.bf16.mxu1 %v1996_v56  ;;  %1416 = vmatprep.subr.bf16.mxu0 %v1999_v57 }
 0x157   :  { %1376 = vmatpush1.bf16.msra.mxu1 %v1994_v58  ;;  %1417 = vmatpush1.bf16.msra.mxu0 %v1997_v59 }
 0x158   :  { %1377 = vmatprep.subr.bf16.mxu1 %v2002_v60  ;;  %1418 = vmatprep.subr.bf16.mxu0 %v2005_v61 }
 0x15b   :  { %1378 = vmatpush1.bf16.msra.mxu1 %v2000_v62  ;;  %1419 = vmatpush1.bf16.msra.mxu0 %v2003_v63 }
 0x15c   :  { %1379 = vmatprep.subr.bf16.mxu1 %v2008_v0  ;;  %1420 = vmatprep.subr.bf16.mxu0 %v2011_v1 }
 0x15f   :  { %1380 = vmatpush1.bf16.msra.mxu1 %v2006_v2  ;;  %1421 = vmatpush1.bf16.msra.mxu0 %v2009_v3 }
 0x160   :  { %1381 = vmatprep.subr.bf16.mxu1 %v2014_v4  ;;  %1422 = vmatprep.subr.bf16.mxu0 %v2017_v5 }
 0x163   :  { %1382 = vmatpush2.bf16.msra.mxu1 %v2012_v6  ;;  %1423 = vmatpush2.bf16.msra.mxu0 %v2015_v7 }
 0x164   :  { %1383 = vmatprep.subr.bf16.mxu1 %v2020_v8  ;;  %1424 = vmatprep.subr.bf16.mxu0 %v2023_v9 }
 0x167   :  { %1384 = vmatpush2.bf16.msra.mxu1 %v2018_v10  ;;  %1425 = vmatpush2.bf16.msra.mxu0 %v2021_v11 }
 0x168   :  { %1385 = vmatprep.subr.bf16.mxu1 %v2026_v12  ;;  %1426 = vmatprep.subr.bf16.mxu0 %v2029_v13 }
 0x16b   :  { %1386 = vmatpush2.bf16.msra.mxu1 %v2024_v14  ;;  %1427 = vmatpush2.bf16.msra.mxu0 %v2027_v15 }
 0x16c   :  { %1387 = vmatprep.subr.bf16.mxu1 %v2032_v16  ;;  %1428 = vmatprep.subr.bf16.mxu0 %v2035_v17 }
 0x16f   :  { %1388 = vmatpush2.bf16.msra.mxu1 %v2030_v18  ;;  %1429 = vmatpush2.bf16.msra.mxu0 %v2033_v19 }
 0x170   :  { %1389 = vmatprep.subr.bf16.mxu1 %v2038_v22  ;;  %1430 = vmatprep.subr.bf16.mxu0 %v2041_v24 }
 0x173   :  { %1390 = vmatpush2.bf16.msra.mxu1 %v2036_v25  ;;  %1431 = vmatpush2.bf16.msra.mxu0 %v2039_v26 }
 0x174   :  { %1391 = vmatprep.subr.bf16.mxu1 %v2044_v27  ;;  %1432 = vmatprep.subr.bf16.mxu0 %v2047_v28 }
 0x177   :  { %1392 = vmatpush2.bf16.msra.mxu1 %v2042_v29  ;;  %1433 = vmatpush2.bf16.msra.mxu0 %v2045_v30 }
 0x178   :  { %1393 = vmatprep.subr.bf16.mxu1 %v2050_v31  ;;  %1434 = vmatprep.subr.bf16.mxu0 %v2053_v32 }
 0x17b   :  { %1394 = vmatpush2.bf16.msra.mxu1 %v2048_v33  ;;  %1435 = vmatpush2.bf16.msra.mxu0 %v2051_v34 }
 0x17c   :  { %1395 = vmatprep.subr.bf16.mxu1 %v2056_v35  ;;  %1436 = vmatprep.subr.bf16.mxu0 %v2059_v36 }
 0x17f   :  { %1396 = vmatpush2.bf16.msra.mxu1 %v2054_v37  ;;  %1437 = vmatpush2.bf16.msra.mxu0 %v2057_v38 }
 0x180   :  { %1806 = vmatprep.subr.bf16.mxu1 %v2060_v39 }
 0x202   :  { %v724_v47 = vpop.f32.mrf.mxu1  ;;  %v765_v48 = vpop.f32.mrf.mxu0 }
 0x203   :  { %v2380_v49 = vadd.f32 %v724_v47, %v353_v43  ;;  %v2382_v50 = vadd.f32 %v765_v48, %v361_v44 }
 0x204   :  { %v726_v51 = vpop.f32.mrf.mxu1  ;;  %v767_v52 = vpop.f32.mrf.mxu0 }
 0x205   :  { %v772_v53 = vrot.slane %v2380_v49, 4  ;;  %v784_v54 = vrot.slane %v2382_v50, 4  ;;  %v2386_v55 = vadd.f32 %v726_v51, %v357_v45  ;;  %v2388_v56 = vadd.f32 %v767_v52, %v365_v46 }
 0x206   :  { %v728_v57 = vpop.f32.mrf.mxu1  ;;  %v769_v58 = vpop.f32.mrf.mxu0 }
 0x207   :  { %v773_v59 = vadd.f32 %v772_v53, %v2380_v49  ;;  %v785_v60 = vadd.f32 %v784_v54, %v2382_v50  ;;  %v778_v61 = vrot.slane %v2386_v55, 4  ;;  %v790_v62 = vrot.slane %v2388_v56, 4 }
 0x208   :  { %v729_v63 = vpop.f32.mrf.mxu1  ;;  %v770_v0 = vpop.f32.mrf.mxu0 }
 0x209   :  { %v774_v1 = vrot.slane %v773_v59, 2  ;;  %v786_v2 = vrot.slane %v785_v60, 2  ;;  %v779_v3 = vadd.f32 %v778_v61, %v2386_v55  ;;  %v791_v4 = vadd.f32 %v790_v62, %v2388_v56 }
 0x20b   :  { %v775_v5 = vadd.f32 %v774_v1, %v773_v59  ;;  %v787_v6 = vadd.f32 %v786_v2, %v785_v60  ;;  %v780_v7 = vrot.slane %v779_v3, 2  ;;  %v792_v8 = vrot.slane %v791_v4, 2 }
 0x20d   :  { %v776_v9 = vrot.slane %v775_v5, 1  ;;  %v788_v10 = vrot.slane %v787_v6, 1  ;;  %v781_v11 = vadd.f32 %v780_v7, %v779_v3  ;;  %v793_v12 = vadd.f32 %v792_v8, %v791_v4 }
 0x20e   :  { %v2268_v8 = vmov 1966171168  }
 0x20f   :  { %v777_v13 = vadd.f32 %v776_v9, %v775_v5  ;;  %v789_v14 = vadd.f32 %v788_v10, %v787_v6  ;;  %v782_v15 = vrot.slane %v781_v11, 1  ;;  %v794_v16 = vrot.slane %v793_v12, 1 }
 0x210   :  { %v853_v9 = vunpack.c.l.s4 %v2268_v8  ;;  %v2071_v8 = vld [vmem:[#allocation13 + $0x10] sm:$0xff]  }
 0x211   :  { %v2396_v17 = vmul.f32 0.125, %v777_v13  ;;  %v2398_v18 = vmul.f32 0.125, %v789_v14  ;;  %v783_v19 = vadd.f32 %v782_v15, %v781_v11  ;;  %v795_v22 = vadd.f32 %v794_v16, %v793_v12 }
 0x212   :  { %v854_v10 = vunpack.c.0.s8 %v853_v9  ;;  %v2072_v9 = vld [vmem:[#allocation13 + $0x48] sm:$0xff]  }
 0x213   :  { %v801_v24 = vsub.f32 %v2380_v49, %v2396_v17  ;;  %v803_v25 = vsub.f32 %v2382_v50, %v2398_v18  ;;  %v2404_v26 = vmul.f32 0.125, %v783_v19  ;;  %v2406_v27 = vmul.f32 0.125, %v795_v22 }
 0x214   :  { %v857_v13 = vsub.s32 %v854_v10, %v2357_v20  ;;  %v2073_v10 = vld [vmem:[#allocation13 + $0x8] sm:$0xff]  }
 0x215   :  { %v805_v28 = vmul.f32 %v801_v24, %v801_v24  ;;  %v807_v29 = vmul.f32 %v803_v25, %v803_v25  ;;  %v802_v30 = vsub.f32 %v2386_v55, %v2404_v26  ;;  %v804_v31 = vsub.f32 %v2388_v56, %v2406_v27 }
 0x217   :  { %v809_v32 = vrot.slane %v805_v28, 4  ;;  %v821_v33 = vrot.slane %v807_v29, 4  ;;  %v806_v34 = vmul.f32 %v802_v30, %v802_v30  ;;  %v808_v35 = vmul.f32 %v804_v31, %v804_v31 }
 0x219   :  { %v810_v36 = vadd.f32 %v809_v32, %v805_v28  ;;  %v822_v37 = vadd.f32 %v821_v33, %v807_v29  ;;  %v815_v38 = vrot.slane %v806_v34, 4  ;;  %v827_v39 = vrot.slane %v808_v35, 4  ;;  %v837_v28 = vld [vmem:[%s2448_s5] sm:$0xf] }
 0x21b   :  { %v811_v41 = vrot.slane %v810_v36, 2  ;;  %v823_v43 = vrot.slane %v822_v37, 2  ;;  %v816_v44 = vadd.f32 %v815_v38, %v806_v34  ;;  %v828_v45 = vadd.f32 %v827_v39, %v808_v35 }
 0x21d   :  { %v812_v46 = vadd.f32 %v811_v41, %v810_v36  ;;  %v824_v47 = vadd.f32 %v823_v43, %v822_v37  ;;  %v817_v48 = vrot.slane %v816_v44, 2  ;;  %v829_v51 = vrot.slane %v828_v45, 2 }
 0x21f   :  { %v813_v52 = vrot.slane %v812_v46, 1  ;;  %v825_v53 = vrot.slane %v824_v47, 1  ;;  %v818_v54 = vadd.f32 %v817_v48, %v816_v44  ;;  %v830_v57 = vadd.f32 %v829_v51, %v828_v45  ;;  %v876_v45 = vld [vmem:[#allocation10] sm:$0xf] }
 0x221   :  { %v814_v58 = vadd.f32 %v813_v52, %v812_v46  ;;  %v826_v59 = vadd.f32 %v825_v53, %v824_v47  ;;  %v819_v60 = vrot.slane %v818_v54, 1  ;;  %v831_v61 = vrot.slane %v830_v57, 1 }
 0x223   :  { %v833_v62 = vmul.f32 0.125, %v814_v58  ;;  %v835_v63 = vmul.f32 0.125, %v826_v59  ;;  %v820_v0 = vadd.f32 %v819_v60, %v818_v54  ;;  %v832_v1 = vadd.f32 %v831_v61, %v830_v57 }
 0x225   :  { %v838_v2 = vadd.f32 1e-05, %v833_v62  ;;  %v840_v3 = vadd.f32 1e-05, %v835_v63  ;;  %v834_v4 = vmul.f32 0.125, %v820_v0  ;;  %v836_v5 = vmul.f32 0.125, %v832_v1 }
 0x226   :  { %v2061_v0 = vld [vmem:[#allocation13 + $0x38] sm:$0xff]   ;;  %v2062_v1 = vld [vmem:[#allocation13 + $0x70] sm:$0xff]  }
 0x227   :  { %2076 = vrsqrt.f32 %v838_v2  ;;  %v839_v6 = vadd.f32 1e-05, %v834_v4  ;;  %v841_v7 = vadd.f32 1e-05, %v836_v5  ;;  %v2065_v2 = vld [vmem:[#allocation13 + $0x28] sm:$0xff]   ;;  %v2067_v4 = vld [vmem:[#allocation13 + $0x20] sm:$0xff]  }
 0x228   :  { %2078 = vrsqrt.f32 %v840_v3  ;;  %v2066_v3 = vld [vmem:[#allocation13 + $0x60] sm:$0xff]   ;;  %v2068_v5 = vld [vmem:[#allocation13 + $0x58] sm:$0xff]  }
 0x229   :  { %2080 = vrsqrt.f32 %v839_v6  ;;  %v2069_v6 = vld [vmem:[#allocation13 + $0x18] sm:$0xff]  }
 0x22a   :  { %2082 = vrsqrt.f32 %v841_v7  ;;  %v2070_v7 = vld [vmem:[#allocation13 + $0x50] sm:$0xff]  }
 0x234   :  { %v2077_v11 = vpop.eup %2076 }
 0x235   :  { %v2079_v12 = vpop.eup %2078 }
 0x236   :  { %v2081_v14 = vpop.eup %2080 }
 0x237   :  { %v2083_v15 = vpop.eup %2082  ;;  %v850_v16 = vcombine.low %v2077_v11, %v2081_v14  ;;  %v2074_v11 = vld [vmem:[#allocation13 + $0x40] sm:$0xff]  }
 0x238   :  { %v851_v19 = vcombine.low %v2079_v12, %v2083_v15  ;;  %v2075_v12 = vld [vmem:[#allocation13] sm:$0xff]  }
 0x239   :  { %v858_v22 = vrot.slane %v850_v16, %v857_v13 }
 0x23a   :  { %v865_v24 = vrot.slane %v851_v19, %v857_v13 }
 0x23c   :  { %v866_v25 = vcombine.low %v858_v22, %v865_v24 }
 0x23e   :  { %v873_v29 = vrot.slane %v866_v25, %v857_v13 }
 0x240   :  { %v875_v30 = vmul.f32 %v873_v29, %v837_v28 }
 0x242   :  { %v889_v31 = vrot.slane %v875_v30, %v2368_v40  ;;  %v893_v32 = vrot.slane %v875_v30, %v2374_v42  ;;  %v881_v33 = vrot.slane %v875_v30, %v2360_v21  ;;  %v885_v20 = vrot.slane %v875_v30, %v2363_v23 }
 0x244   :  { %v900_v34 = vmul.f32 %v889_v31, %v2398_v18  ;;  %v901_v35 = vmul.f32 %v893_v32, %v2406_v27  ;;  %v898_v36 = vmul.f32 %v881_v33, %v2396_v17  ;;  %v899_v37 = vmul.f32 %v885_v20, %v2404_v26 }
 0x245   :  { %v933_v48 = vmul.f32 %v885_v20, %v2386_v55  ;;  %v935_v51 = vmul.f32 %v893_v32, %v2388_v56  ;;  %v932_v18 = vmul.f32 %v881_v33, %v2380_v49  ;;  %v934_v27 = vmul.f32 %v889_v31, %v2382_v50 }
 0x246   :  { %v907_v38 = vcombine.low %v900_v34, %v901_v35  ;;  %v906_v39 = vcombine.low %v898_v36, %v899_v37 }
 0x248   :  { %v921_v41 = vrot.slane %v907_v38, %v857_v13  ;;  %v914_v43 = vrot.slane %v906_v39, %v857_v13 }
 0x24a   :  { %v922_v44 = vcombine.low %v914_v43, %v921_v41 }
 0x24c   :  { %v929_v46 = vrot.slane %v922_v44, %v857_v13  ;;  %v1033_v13 = vld [vmem:[%s2451_s8] sm:$0x3] }
 0x24d   :  { %v1038_v14 = vrot.slane %v1033_v13, %v2360_v21  ;;  %v1042_v15 = vrot.slane %v1033_v13, %v2363_v23 }
 0x24e   :  { %v931_v47 = vsub.f32 %v876_v45, %v929_v46 }
 0x250   :  { %v944_v17 = vrot.slane %v931_v47, %v2363_v23  ;;  %v952_v26 = vrot.slane %v931_v47, %v2374_v42  ;;  %v940_v52 = vrot.slane %v931_v47, %v2360_v21  ;;  %v948_v53 = vrot.slane %v931_v47, %v2368_v40  ;;  %v2063_v40 = vld [vmem:[#allocation13 + $0x30] sm:$0xff]   ;;  %v2064_v42 = vld [vmem:[#allocation13 + $0x68] sm:$0xff]  }
 0x251   :  { %v1789_v23 = vld [vmem:[%s2453_s10] ss:$0 sm:$0xff] }
 0x252   :  { %v958_v54 = vadd.f32 %v944_v17, %v933_v48  ;;  %v960_v57 = vadd.f32 %v952_v26, %v935_v51  ;;  %v957_v58 = vadd.f32 %v940_v52, %v932_v18  ;;  %v959_v59 = vadd.f32 %v948_v53, %v934_v27 }
 0x254   :  { %v962_v60 = vmax.f32 %v958_v54, 0.0  ;;  %v964_v55 = vmax.f32 %v960_v57, 0.0  ;;  %v961_v61 = vmax.f32 %v957_v58, 0.0  ;;  %v963_v56 = vmax.f32 %v959_v59, 0.0 }
 0x256   :  { %v966_v62 = vpack.c.bf16 %v962_v60, %v962_v60  ;;  %v968_v49 = vpack.c.bf16 %v964_v55, %v964_v55  ;;  %v965_v63 = vpack.c.bf16 %v961_v61, %v961_v61  ;;  %v967_v50 = vpack.c.bf16 %v963_v56, %v963_v56 }
 0x258   :  { %1397 = vmatprep.mubr.bf16.mxu1 %v966_v62  ;;  %1438 = vmatprep.mubr.bf16.mxu0 %v968_v49 }
 0x259   :  { %1398 = vmatmul.mubr.bf16.vlgmr.msra.gmra.mxu1 %v965_v63  ;;  %1439 = vmatmul.mubr.bf16.vlgmr.msra.gmra.mxu0 %v967_v50 }
 0x25a   :  { %1807 = vmatpush3.bf16.msra.mxu1 %v2061_v0 }
 0x25b   :  { %1808 = vmatprep.subr.bf16.mxu1 %v2062_v1 }
 0x25e   :  { %1809 = vmatpush3.bf16.msra.mxu1 %v2063_v40 }
 0x25f   :  { %1810 = vmatprep.subr.bf16.mxu1 %v2064_v42 }
 0x262   :  { %1811 = vmatpush3.bf16.msra.mxu1 %v2065_v2 }
 0x263   :  { %1812 = vmatprep.subr.bf16.mxu1 %v2066_v3 }
 0x266   :  { %1813 = vmatpush3.bf16.msra.mxu1 %v2067_v4 }
 0x267   :  { %1814 = vmatprep.subr.bf16.mxu1 %v2068_v5 }
 0x26a   :  { %1815 = vmatpush3.bf16.msra.mxu1 %v2069_v6 }
 0x26b   :  { %1816 = vmatprep.subr.bf16.mxu1 %v2070_v7 }
 0x26e   :  { %1817 = vmatpush3.bf16.msra.mxu1 %v2071_v8 }
 0x26f   :  { %1818 = vmatprep.subr.bf16.mxu1 %v2072_v9 }
 0x272   :  { %1819 = vmatpush3.bf16.msra.mxu1 %v2073_v10 }
 0x273   :  { %1820 = vmatprep.subr.bf16.mxu1 %v2074_v11 }
 0x276   :  { %1821 = vmatpush3.bf16.msra.mxu1 %v2075_v12 }
 0x319   :  { %v1399_v16 = vpop.f32.mrf.mxu1  ;;  %v1440_v19 = vpop.f32.mrf.mxu0 }
 0x31a   :  { %v1400_v22 = vadd.f32 %v1399_v16, %v1038_v14 }
 0x31b   :  { %v1401_v24 = vpop.f32.mrf.mxu1  ;;  %v1442_v25 = vpop.f32.mrf.mxu0 }
 0x31c   :  { %v1441_v28 = vadd.f32 %v1440_v19, %v1400_v22  ;;  %v1402_v29 = vadd.f32 %v1401_v24, %v1042_v15 }
 0x31d   :  { %v1403_v30 = vpop.f32.mrf.mxu1  ;;  %v1444_v31 = vpop.f32.mrf.mxu0 }
 0x31e   :  { %v1443_v32 = vadd.f32 %v1442_v25, %v1402_v29  ;;  %v1447_v33 = vmax.f32 %v1441_v28, 0.0 }
 0x31f   :  { %v1404_v20 = vpop.f32.mrf.mxu1  ;;  %v1445_v34 = vpop.f32.mrf.mxu0 }
 0x320   :  { %v1448_v35 = vmax.f32 %v1443_v32, 0.0  ;;  %v1449_v37 = vpack.c.bf16 %v1447_v33, %v1447_v33 }
 0x322   :  { %v1450_v36 = vpack.c.bf16 %v1448_v35, %v1448_v35 }
 0x324   :  { %1618 = vmatprep.mubr.bf16.mxu1 %v1450_v36 }
 0x325   :  { %1619 = vmatmul.mubr.bf16.vlgmr.msra.gmra.mxu1 %v1449_v37 }
 0x3e5   :  { %v1822_v21 = vpop.f32.mrf.mxu1 }
 0x3e7   :  { %v1823_v38 = vpop.f32.mrf.mxu1 }
 0x3e8   :  { %v1824_v39 = vadd.f32 %v1823_v38, %v1822_v21 }
 0x3e9   :  { %v1825_v41 = vpop.f32.mrf.mxu1 }
 0x3ea   :  { %v1621_v43 = vadd.f32 %v1824_v39, %v1789_v23 }
 0x3eb   :  { %v1826_v44 = vpop.f32.mrf.mxu1 }
 0x3ec   :  { %1626 = vst [vmem:[#allocation14] sm:$0xff] %v1621_v43 }
 0x3ed   :  { %2235 = shalt.err (!%p2232_p11)
}
 0x3ee   :  { %1636 = dma.vmem_to_hbm [thread:$0]  %s1634_s3, 128, %s2454_s11, [#allocation4]  }
 0x3ef   :  { %2252 = dma.done.wait [#allocation4], 128  }
 0x3f0   :  { %2253 = vsyncadd [#allocation4], 4294967168 }
 0x3f1   :  { %1640 = vsyncpa [#allocation3], 1 }
 0x3f2   :  { %1641 = vsyncpa [#allocation6], 1 }
 0x3f3   :  { %1642 = vsyncpa [#allocation9], 1 }
 0x3f4   :  { %1643 = vsyncpa [#allocation12], 1 }
 0x3f5   :  { %1644 = vsyncpa [#allocation4], 1 }

</bundles_post_ra>
